<compile_context>
chip_gen: v5e
topology: v5e:2x2
jax: 0.10.0
libtpu: 0.0.40
codegen_flags: <defaults>
</compile_context>

<pallas_src>
import functools
import math

import jax
import jax.numpy as jnp
from jax.experimental import pallas as pl
from jax.experimental.pallas import tpu as pltpu

_LANE = 128
_SUBLANE = 8


def _diag_gaussian_kernel(x_ref, w_ref, b_ref, logstd_ref, mean_ref, std_ref, *,
                          norm_actions_pre_sampling, clip_std,
                          log_min_std, log_max_std):
    # ---- mean = x @ W^T + b  (W pre-transposed / lane-padded to [K, Npad]) --
    mean = jnp.dot(x_ref[...], w_ref[...], preferred_element_type=jnp.float32)
    mean = mean + b_ref[...]
    if norm_actions_pre_sampling:
        mean = jnp.tanh(mean)
    mean_ref[...] = mean.astype(mean_ref.dtype)

    # ---- std (fused; one vreg of VPU/EUP work, hidden under the matmul) ----
    # Written unconditionally with identical values on every grid step so the
    # constant-index output block is valid regardless of which core / step
    # performs the final writeback (megacore-safe, no pl.when needed).
    logstd = logstd_ref[...]
    if clip_std:
        # std = exp(_softclip(logstd, log_min_std, log_max_std, alpha=1))
        y_scale = (log_max_std - log_min_std) * 0.5
        offset = (log_max_std + log_min_std) * 0.5
        x_scale = 2.0 / (log_max_std - log_min_std)
        std = jnp.exp(jnp.tanh((logstd - offset) * x_scale) * y_scale + offset)
    else:
        # Original module hard-codes the 1e-6 floor (ignores the min_std arg).
        std = jnp.maximum(jnp.float32(1e-6), jnp.exp(logstd))
    std_ref[...] = std.astype(std_ref.dtype)


def prepare_params(weight, bias, logstd):
    """One-time parameter prep: transpose W and pad the output axis to 128 lanes.

    Hoisted out of the per-call forward so each forward does no XLA-side
    transpose / pad / dynamic-update-slice work.
    """
    num_outputs, num_inputs = weight.shape
    n_pad = pl.cdiv(num_outputs, _LANE) * _LANE
    pad = n_pad - num_outputs
    w_t = jnp.pad(jnp.asarray(weight, jnp.float32).T, ((0, 0), (0, pad)))
    bias_p = jnp.pad(jnp.asarray(bias, jnp.float32), (0, pad)).reshape(1, n_pad)
    logstd_p = jnp.pad(jnp.asarray(logstd, jnp.float32), (0, pad)).reshape(1, n_pad)
    return w_t, bias_p, logstd_p, num_outputs


def diag_gaussian_forward(x, w_t, bias_p, logstd_p, num_outputs, *,
                          norm_actions_pre_sampling, min_std, max_std,
                          block_b=512, out_dtype=None, num_cores=None,
                          return_padded=False):
    """Fused DiagGaussian forward.

    Returns (action_mean [B, num_outputs], std [num_outputs]) — the parameters
    of the diagonal Normal distribution produced by DiagGaussian.forward.
    """
    B, num_inputs = x.shape
    k, n_pad = w_t.shape
    assert k == num_inputs, "w_t must be the pre-transposed [num_inputs, n_pad] weight"

    out_dtype = x.dtype if out_dtype is None else out_dtype

    clip_std = (max_std != 0)
    if clip_std:
        if max_std == min_std:
            raise ValueError(
                "DiagGaussian softclip requires min_std != max_std "
                "(zero-width range would divide by zero).")
        log_min_std = math.log(min_std)
        log_max_std = math.log(max_std)
    else:
        log_min_std = log_max_std = 0.0

    # ---- batch tiling -------------------------------------------------------
    # Single-core chips (v5e/v6e): biggest tile up to block_b — extra grid
    # steps are pure overhead.  Multi-core chips (v7x): split into >= num_cores
    # tiles so dimension_semantics=("parallel",) shards work across both cores.
    if num_cores is None:
        num_cores = int(getattr(jax.devices()[0], "num_cores", 1) or 1)
    tb = min(block_b, pl.cdiv(B, _SUBLANE) * _SUBLANE)
    if num_cores > 1 and B > _SUBLANE:
        per_core = pl.cdiv(pl.cdiv(B, num_cores), _SUBLANE) * _SUBLANE
        tb = min(tb, max(_SUBLANE, per_core))
    grid_b = pl.cdiv(B, tb)   # ragged last tile: Pallas masks reads/writes

    # ---- grid-invariant weight block (resident in VMEM) --------------------
    w_bytes = num_inputs * n_pad * 4
    if w_bytes > (8 << 20):
        # Large K: don't double-buffer the invariant weight (v7x: 64 MiB VMEM).
        w_spec = pl.BlockSpec((num_inputs, n_pad), lambda i: (0, 0),
                              pipeline_mode=pl.Buffered(1))
        w_bufs = 1
    else:
        w_spec = pl.BlockSpec((num_inputs, n_pad), lambda i: (0, 0))
        w_bufs = 2

    # Scoped-VMEM limit derived from the actual footprint (with headroom).
    vmem_est = 4 * (2 * tb * num_inputs + w_bufs * num_inputs * n_pad
                    + 2 * tb * n_pad + 8 * n_pad)
    vmem_limit = int(min(max(2 * vmem_est, 32 << 20), 128 << 20))

    kernel = functools.partial(
        _diag_gaussian_kernel,
        norm_actions_pre_sampling=norm_actions_pre_sampling,
        clip_std=clip_std, log_min_std=log_min_std, log_max_std=log_max_std)

    mean_p, std_p = pl.pallas_call(
        kernel,
        out_shape=(jax.ShapeDtypeStruct((B, n_pad), out_dtype),
                   jax.ShapeDtypeStruct((1, n_pad), jnp.float32)),
        grid=(grid_b,),
        in_specs=[
            pl.BlockSpec((tb, num_inputs), lambda i: (i, 0)),   # x batch tile
            w_spec,                                             # W^T resident
            pl.BlockSpec((1, n_pad), lambda i: (0, 0)),         # bias resident
            pl.BlockSpec((1, n_pad), lambda i: (0, 0)),         # logstd resident
        ],
        out_specs=(
            pl.BlockSpec((tb, n_pad), lambda i: (i, 0)),        # mean tile
            pl.BlockSpec((1, n_pad), lambda i: (0, 0)),         # std (constant)
        ),
        compiler_params=pltpu.CompilerParams(
            dimension_semantics=("parallel",),                  # megacore on v7x
            vmem_limit_bytes=vmem_limit,
        ),
    )(x, w_t, bias_p, logstd_p)

    if return_padded:
        # Lane-dense [B, n_pad] / [n_pad]; caller slices lazily at point of use.
        return mean_p, std_p[0]
    # TODO(synk): torch.distributions.Normal (FixedNormal) construction is
    # bookkeeping only; we return its (loc, scale) parameters.
    return mean_p[:, :num_outputs], std_p[0, :num_outputs]


def init_params(key, num_inputs, num_outputs, init_std, gain=1.0):
    """Deterministic equivalent of init_normc_ (row-normalized normal) + zero bias."""
    w = jax.random.normal(key, (num_outputs, num_inputs), dtype=jnp.float32)
    w = w * (gain / jnp.sqrt(jnp.sum(w * w, axis=1, keepdims=True)))
    b = jnp.zeros((num_outputs,), dtype=jnp.float32)
    logstd = jnp.full((num_outputs,), math.log(init_std), dtype=jnp.float32)
    return w, b, logstd


if __name__ == "__main__":
    key = jax.random.PRNGKey(0)
    k_x, k_w, k_x2 = jax.random.split(key, 3)

    batch = 8
    num_inputs = 32
    num_outputs = 8
    init_std = 0.5
    min_std = 0.01

    x = jax.random.normal(k_x, (batch, num_inputs), dtype=jnp.float32)
    weight, bias, logstd = init_params(k_w, num_inputs, num_outputs, init_std)
    w_t, bias_p, logstd_p, n_out = prepare_params(weight, bias, logstd)

    # ---- branch 1: clip_std=True (max_std != 0 -> softclip), tanh on mean ----
    max_std = 1.0
    mean, std = diag_gaussian_forward(
        x, w_t, bias_p, logstd_p, n_out,
        norm_actions_pre_sampling=True, min_std=min_std, max_std=max_std)
    jax.block_until_ready((mean, std))

    ref_mean = jnp.tanh(x @ weight.T + bias)
    lmin, lmax = math.log(min_std), math.log(max_std)
    y_scale, off = (lmax - lmin) / 2.0, (lmax + lmin) / 2.0
    x_scale = 2.0 / (lmax - lmin)
    ref_std = jnp.exp(jnp.tanh((logstd - off) * x_scale) * y_scale + off)
    assert mean.shape == (batch, num_outputs) and std.shape == (num_outputs,)
    assert jnp.allclose(mean, ref_mean, atol=1e-5, rtol=1e-5)
    assert jnp.allclose(std, ref_std, atol=1e-5, rtol=1e-5)

    # ---- branch 2: clip_std=False, no tanh, ragged batch (B < tile) ----
    batch2 = 5
    x2 = jax.random.normal(k_x2, (batch2, num_inputs), dtype=jnp.float32)
    mean2, std2 = diag_gaussian_forward(
        x2, w_t, bias_p, logstd_p, n_out,
        norm_actions_pre_sampling=False, min_std=min_std, max_std=0)
    jax.block_until_ready((mean2, std2))
    ref_mean2 = x2 @ weight.T + bias
    ref_std2 = jnp.maximum(jnp.float32(1e-6), jnp.exp(logstd))
    assert mean2.shape == (batch2, num_outputs) and std2.shape == (num_outputs,)
    assert jnp.allclose(mean2, ref_mean2, atol=1e-5, rtol=1e-5)
    assert jnp.allclose(std2, ref_std2, atol=1e-5, rtol=1e-5)

    print("KERNEL_OK")
</pallas_src>

<mosaic_0001>
module attributes {stable_mosaic.version = 11 : i64} {
  func.func @_diag_gaussian_kernel(%arg0: i32, %arg1: memref<8x32xf32, #tpu.memory_space<vmem>>, %arg2: memref<32x128xf32, #tpu.memory_space<vmem>>, %arg3: memref<1x128xf32, #tpu.memory_space<vmem>>, %arg4: memref<1x128xf32, #tpu.memory_space<vmem>>, %arg5: memref<8x128xf32, #tpu.memory_space<vmem>>, %arg6: memref<1x128xf32, #tpu.memory_space<vmem>>) attributes {dimension_semantics = [#tpu.dimension_semantics<parallel>], iteration_bounds = array<i64: 1>, scalar_prefetch = 0 : i64, scratch_operands = 0 : i64, tpu.core_type = #tpu.core_type<tc>, window_params = [{transform_indices = @transform_0, window_bounds = array<i64: 8, 32>}, {pipeline_mode = #tpu.pipeline_mode<synchronous>, transform_indices = @transform_1, window_bounds = array<i64: 32, 128>}, {pipeline_mode = #tpu.pipeline_mode<synchronous>, transform_indices = @transform_2, window_bounds = array<i64: 1, 128>}, {pipeline_mode = #tpu.pipeline_mode<synchronous>, transform_indices = @transform_3, window_bounds = array<i64: 1, 128>}, {transform_indices = @transform_4, window_bounds = array<i64: 8, 128>}, {pipeline_mode = #tpu.pipeline_mode<synchronous>, transform_indices = @transform_5, window_bounds = array<i64: 1, 128>}]} {
    %c0 = arith.constant 0 : index
    %c0_0 = arith.constant 0 : index
    %0 = vector.load %arg1[%c0, %c0_0] : memref<8x32xf32, #tpu.memory_space<vmem>>, vector<8x32xf32>
    %c0_1 = arith.constant 0 : index
    %c0_2 = arith.constant 0 : index
    %1 = vector.load %arg2[%c0_1, %c0_2] : memref<32x128xf32, #tpu.memory_space<vmem>>, vector<32x128xf32>
    %cst = arith.constant dense<0.000000e+00> : vector<8x128xf32>
    %2 = tpu.matmul %0, %1, %cst {dimension_numbers = #tpu.dot_dimension_numbers<[1], [0], [0], [1], [0, 0, 1, 1], [], []>} : vector<8x32xf32>, vector<32x128xf32>, vector<8x128xf32> -> vector<8x128xf32>
    %c0_3 = arith.constant 0 : index
    %c0_4 = arith.constant 0 : index
    %3 = vector.load %arg3[%c0_3, %c0_4] : memref<1x128xf32, #tpu.memory_space<vmem>>, vector<1x128xf32>
    %4 = vector.broadcast %3 : vector<1x128xf32> to vector<8x128xf32>
    %5 = arith.addf %2, %4 : vector<8x128xf32>
    %6 = math.tanh %5 : vector<8x128xf32>
    %c0_5 = arith.constant 0 : index
    %c0_6 = arith.constant 0 : index
    %7 = vector.load %arg5[%c0_5, %c0_6] : memref<8x128xf32, #tpu.memory_space<vmem>>, vector<8x128xf32>
    tpu.vector_store %arg5[%c0_5, %c0_6], %6 {strides = array<i32>} : memref<8x128xf32, #tpu.memory_space<vmem>>, vector<8x128xf32>,
    %c0_7 = arith.constant 0 : index
    %c0_8 = arith.constant 0 : index
    %8 = vector.load %arg4[%c0_7, %c0_8] : memref<1x128xf32, #tpu.memory_space<vmem>>, vector<1x128xf32>
    %cst_9 = arith.constant -2.30258512 : f32
    %9 = vector.broadcast %cst_9 : f32 to vector<1x128xf32>
    %10 = arith.subf %8, %9 : vector<1x128xf32>
    %cst_10 = arith.constant 0.434294492 : f32
    %11 = vector.broadcast %cst_10 : f32 to vector<1x128xf32>
    %12 = arith.mulf %10, %11 : vector<1x128xf32>
    %13 = math.tanh %12 : vector<1x128xf32>
    %cst_11 = arith.constant 2.30258512 : f32
    %14 = vector.broadcast %cst_11 : f32 to vector<1x128xf32>
    %15 = arith.mulf %13, %14 : vector<1x128xf32>
    %cst_12 = arith.constant -2.30258512 : f32
    %16 = vector.broadcast %cst_12 : f32 to vector<1x128xf32>
    %17 = arith.addf %15, %16 : vector<1x128xf32>
    %18 = math.exp %17 : vector<1x128xf32>
    %c0_13 = arith.constant 0 : index
    %c0_14 = arith.constant 0 : index
    %19 = vector.load %arg6[%c0_13, %c0_14] : memref<1x128xf32, #tpu.memory_space<vmem>>, vector<1x128xf32>
    tpu.vector_store %arg6[%c0_13, %c0_14], %18 {strides = array<i32>} : memref<1x128xf32, #tpu.memory_space<vmem>>, vector<1x128xf32>,
    return
  }
  func.func @transform_0(%arg0: i32) -> (i32, i32) {
    %c0_i32 = arith.constant 0 : i32
    %c0_i32_0 = arith.constant 0 : i32
    return %arg0, %c0_i32 : i32, i32
  }
  func.func @transform_1(%arg0: i32) -> (i32, i32) {
    %c0_i32 = arith.constant 0 : i32
    %c0_i32_0 = arith.constant 0 : i32
    %c0_i32_1 = arith.constant 0 : i32
    return %c0_i32, %c0_i32_0 : i32, i32
  }
  func.func @transform_2(%arg0: i32) -> (i32, i32) {
    %c0_i32 = arith.constant 0 : i32
    %c0_i32_0 = arith.constant 0 : i32
    %c0_i32_1 = arith.constant 0 : i32
    return %c0_i32, %c0_i32_0 : i32, i32
  }
  func.func @transform_3(%arg0: i32) -> (i32, i32) {
    %c0_i32 = arith.constant 0 : i32
    %c0_i32_0 = arith.constant 0 : i32
    %c0_i32_1 = arith.constant 0 : i32
    return %c0_i32, %c0_i32_0 : i32, i32
  }
  func.func @transform_4(%arg0: i32) -> (i32, i32) {
    %c0_i32 = arith.constant 0 : i32
    %c0_i32_0 = arith.constant 0 : i32
    return %arg0, %c0_i32 : i32, i32
  }
  func.func @transform_5(%arg0: i32) -> (i32, i32) {
    %c0_i32 = arith.constant 0 : i32
    %c0_i32_0 = arith.constant 0 : i32
    %c0_i32_1 = arith.constant 0 : i32
    return %c0_i32, %c0_i32_0 : i32, i32
  }
}

</mosaic_0001>

<bundles_post_ra>
// kernel: tpu_custom_call.1
= control target key start
LH: loop header
LB: loop body
LE: loop exit
PB: predicated region body
PF: predicated region fallthrough
CT: control target
= control target key end

     0   :  { %11 = vsyncpa [#allocation3], 0  ;;  %s302_s0 = inlined_call_operand.hbm [shape: f32[8,32], index: 0, kind: input, shape index: {}]   ;;  %s303_s1 = inlined_call_operand.hbm [shape: f32[32,128], index: 1, kind: input, shape index: {}]   ;;  %s304_s2 = inlined_call_operand.vmem [shape: f32[1,128], index: 2, kind: input, shape index: {}]   ;;  %s305_s3 = inlined_call_operand.vmem [shape: f32[1,128], index: 3, kind: input, shape index: {}]   ;;  %s306_s4 = inlined_call_operand.hbm [shape: f32[8,128], index: 4, kind: output, shape index: {0}]   ;;  %s307_s5 = inlined_call_operand.hbm [shape: f32[1,128], index: 5, kind: output, shape index: {1}]  }
   0x1   :  { %12 = vsyncpa [#allocation6], 0 }
   0x2   :  { %13 = vsyncpa [#allocation4], 0 }
   0x3   :  { %14 = vsyncpa [#allocation9], 0  ;;  %s20_s20 = sshll.u32 %s302_s0, 4  ;;  %s248_s21 = smov [#allocation2]   ;;  %s21_s20 = int_to_ptr.hbm [resolvable:$true] %s20_s20 }
   0x4   :  { %s22_s22 = sshll.u32 %s248_s21, 4  ;;  %s30_s25 = sshll.u32 %s303_s1, 4  ;;  %s23_s22 = int_to_ptr.vmem [resolvable:$true] %s22_s22  ;;  %s31_s25 = int_to_ptr.hbm [resolvable:$true] %s30_s25 }
   0x5   :  { %25 = dma.hbm_to_vmem [thread:$0]  %s21_s20, 128, %s23_s22, [#allocation3]  }
   0x6   :  { %s249_s26 = smov [#allocation5]   ;;  %s250_s28 = smov 128  }
   0x7   :  { %s32_s27 = sshll.u32 %s249_s26, 4  ;;  %s251_s29 = smov 8   ;;  %s33_s27 = int_to_ptr.vmem [resolvable:$true] %s32_s27 }
   0x8   :  { %38 = dma.hbm_to_vmem [thread:$0]  %s31_s25, 512, %s33_s27, [#allocation6], %s250_s28, %s250_s28, %s251_s29  }
   0x9   :  { %240 = dma.done.wait [#allocation3], 128  }
   0xa   :  { %241 = vsyncadd [#allocation3], 4294967168 }
   0xb   :  { %242 = dma.done.wait [#allocation6], 512  }
   0xc   :  { %243 = vsyncadd [#allocation6], 4294966784  ;;  %v55_v0 = vld [vmem:[#allocation5 + $0x18] sm:$0xff]  ;;  %v54_v1 = vld [vmem:[#allocation5 + $0x10] sm:$0xff]  ;;  %vm60_vm0 = vcmask 261120   ;;  %s252_s30 = smov [#allocation8]  }
   0xd   :  { %76 = vmatpush.msra.mxu0 %v55_v0  ;;  %v53_v2 = vld [vmem:[#allocation5 + $0x8] sm:$0xff]  ;;  %v52_v3 = vld [vmem:[#allocation5] sm:$0xff]  ;;  %v51_v4 = vld [vmem:[#allocation2] sm:$0xff]  ;;  %s111_s6 = sshll.u32 %s252_s30, 4  ;;  %s113_s9 = sshll.u32 %s307_s5, 4  ;;  %s112_s6 = int_to_ptr.vmem [resolvable:$true] %s111_s6  ;;  %s114_s9 = int_to_ptr.hbm [resolvable:$true] %s113_s9 }
   0xe   :  { %v86_v5 = vld [vmem:[%s305_s3] sm:$0x1]  ;;  %s253_s11 = smov [#allocation7]   ;;  %s102_s15 = sshll.u32 %s306_s4, 4  ;;  %s103_s15 = int_to_ptr.hbm [resolvable:$true] %s102_s15 }
   0xf   :  { %77 = vmatpush.msra.mxu0 %v54_v1  ;;  %v130_v6 = vadd.f32 2.3025851, %v86_v5  ;;  %v137_v13 = vld [vmem:[%s304_s2] ss:$0 sm:$0xff]  ;;  %s100_s12 = sshll.u32 %s253_s11, 4  ;;  %s101_s12 = int_to_ptr.vmem [resolvable:$true] %s100_s12 }
  0x11   :  { %78 = vmatpush.msra.mxu0 %v53_v2  ;;  %v88_v7 = vmul.f32 0.4342945, %v130_v6 }
  0x13   :  { %79 = vmatpush.msra.mxu0 %v52_v3  ;;  %138 = vtanh.f32 %v88_v7 }
  0x14   :  { %129 = vmatmul.msk.f32.vlgmr.msra.gmra.mxu0 %vm60_vm0, %v51_v4 }
  0x19   :  { %v139_v8 = vpop.eup %138 }
  0x1a   :  { %v90_v9 = vmul.f32 2.3025851, %v139_v8 }
  0x1c   :  { %v91_v10 = vadd.f32 -2.3025851, %v90_v9 }
  0x1e   :  { %v92_v11 = vmul.f32 1.442695, %v91_v10 }
  0x20   :  { %140 = vpow2.f32 %v92_v11 }
  0x26   :  { %v141_v12 = vpop.eup %140 }
  0x27   :  { %94 = vst [vmem:[#allocation8] sm:$0x1] %v141_v12 }
  0x28   :  { %116 = dma.vmem_to_hbm [thread:$0]  %s112_s6, 16, %s114_s9, [#allocation9]  }
  0x91   :  { %v81_v14 = vpop.f32.mrf.mxu0 }
  0x92   :  { %v82_v15 = vadd.f32 %v137_v13, %v81_v14 }
  0x94   :  { %142 = vtanh.f32 %v82_v15 }
  0x9a   :  { %v143_v16 = vpop.eup %142 }
  0x9b   :  { %85 = vst [vmem:[#allocation7] sm:$0xff] %v143_v16 }
  0x9c   :  { %105 = dma.vmem_to_hbm [thread:$0]  %s101_s12, 128, %s103_s15, [#allocation4]  }
  0x9d   :  { %244 = dma.done.wait [#allocation4], 128  }
  0x9e   :  { %245 = vsyncadd [#allocation4], 4294967168 }
  0x9f   :  { %246 = dma.done.wait [#allocation9], 16  }
  0xa0   :  { %247 = vsyncadd [#allocation9], 4294967280 }
  0xa1   :  { %125 = vsyncpa [#allocation3], 1 }
  0xa2   :  { %126 = vsyncpa [#allocation6], 1 }
  0xa3   :  { %127 = vsyncpa [#allocation4], 1 }
  0xa4   :  { %128 = vsyncpa [#allocation9], 1 }

</bundles_post_ra>
